<compile_context>
chip_gen: v5e
topology: v5e:2x2
jax: 0.10.0
libtpu: 0.0.40
codegen_flags: <defaults>
</compile_context>

<pallas_src>
import math
import functools

import jax
import jax.numpy as jnp
from jax.experimental import pallas as pl
from jax.experimental.pallas import tpu as pltpu


# ----------------------------------------------------------------------------
# small helpers
# ----------------------------------------------------------------------------

def _layer_norm(x, gamma, beta, eps=1e-5):
    # x: (T, D) f32; gamma/beta: (D,). Biased variance, like torch.nn.LayerNorm.
    mean = jnp.mean(x, axis=-1, keepdims=True)
    var = jnp.mean((x - mean) ** 2, axis=-1, keepdims=True)
    return (x - mean) * jax.lax.rsqrt(var + eps) * gamma + beta


def _gelu_exact(x):
    # PyTorch F.gelu default (exact erf form).
    return x * 0.5 * (1.0 + jax.lax.erf(x * (1.0 / math.sqrt(2.0))))


def _vmem_capacity_bytes():
    """Physical VMEM per core (v5e/v6e: 128 MiB, v7x: 64 MiB); conservative fallback."""
    if hasattr(pltpu, "get_tpu_info"):
        try:
            cap = getattr(pltpu.get_tpu_info(), "vmem_capacity_bytes", None)
            if cap:
                return int(cap)
        except Exception:  # hardware query only; any failure -> conservative default
            pass
    return 64 * 2**20


def _pick_tile(S, max_tile, min_step):
    """Largest divisor of S <= max_tile, preferring multiples of 128, then min_step."""
    if S <= max_tile:
        return S
    for step in (128, min_step):
        best = 0
        for t in range(step, max_tile + 1, step):
            if S % t == 0:
                best = t
        if best:
            return best
    return S


def _pick_ff_chunk(d_ff, max_chunk=1024):
    """d_ff chunk bounding the (q_tile, d_ff) GELU temporary (multiples of 128)."""
    if d_ff <= 2 * max_chunk:
        return d_ff
    best = d_ff
    for c in range(128, max_chunk + 1, 128):
        if d_ff % c == 0:
            best = c
    return best


@functools.lru_cache(maxsize=None)
def _buffered_supported():
    """Feature probe: does this jax build accept pipeline_mode=pl.Buffered(1)?

    The probe is tiny, runs once per process, and keeps any broad exception handling
    away from the real kernels (genuine errors in the real kernels still propagate).
    """
    if not hasattr(pl, "Buffered"):
        return False

    def _probe_kernel(x_ref, o_ref):
        o_ref[...] = x_ref[...] * 2.0

    try:
        x = jnp.arange(16 * 128, dtype=jnp.float32).reshape(16, 128)
        out = pl.pallas_call(
            _probe_kernel,
            out_shape=jax.ShapeDtypeStruct((16, 128), jnp.float32),
            grid=(2,),
            in_specs=[pl.BlockSpec((8, 128), lambda i: (i, 0),
                                   pipeline_mode=pl.Buffered(1))],
            out_specs=pl.BlockSpec((8, 128), lambda i: (i, 0)),
        )(x)
        jax.block_until_ready(out)
        return bool(jnp.allclose(out, x * 2.0))
    except Exception:  # probe only: any failure simply disables single-buffering
        return False


def _const_spec(shape, single_buffer):
    """BlockSpec for a grid-invariant (weight) block on a 2-D grid."""
    idx = lambda b, i: tuple(0 for _ in shape)
    if single_buffer:
        # Grid-invariant block: never re-fetched, one VMEM buffer suffices.
        return pl.BlockSpec(shape, idx, pipeline_mode=pl.Buffered(1))
    return pl.BlockSpec(shape, idx)


# ----------------------------------------------------------------------------
# kernel 1: K/V projection (once per token, hoisted out of the query-tile loop)
# ----------------------------------------------------------------------------

def kv_projection_kernel(x_ref, wk_ref, bk_ref, wv_ref, bv_ref, k_ref, v_ref):
    x = x_ref[0]                                                     # (s_tile, D)
    k = jnp.dot(x, wk_ref[...], preferred_element_type=jnp.float32) + bk_ref[0]
    v = jnp.dot(x, wv_ref[...], preferred_element_type=jnp.float32) + bv_ref[0]
    k_ref[0] = k.astype(k_ref.dtype)
    v_ref[0] = v.astype(v_ref.dtype)


# ----------------------------------------------------------------------------
# kernel 2: attention (with precomputed K/V) + residual/LN1 + FFN + residual/LN2
# ----------------------------------------------------------------------------

def attn_ffn_kernel(
    xq_ref, k_ref, v_ref,
    wq_ref, bq_ref, wo_ref, bo_ref,
    w1_ref, b1_ref, w2_ref, b2_ref,
    g1_ref, be1_ref, g2_ref, be2_ref,
    o_ref,
    *, n_heads, d_k, ff_chunk, recip_approx,
):
    xq = xq_ref[0]                     # (tq, D) query rows handled by this grid step
    k = k_ref[0]                       # (S, D)  precomputed keys (model/MXU dtype)
    v = v_ref[0]                       # (S, D)  precomputed values
    mxu_dt = xq_ref.dtype              # dtype fed to the MXU for the large operands
    tq, D = xq.shape

    # Query projection; the 1/sqrt(d_k) scale was folded into wq/bq by the wrapper.
    # Cast to the MXU dtype once for the whole head loop (not per d_k slice).
    q = (jnp.dot(xq, wq_ref[...], preferred_element_type=jnp.float32)
         + bq_ref[0]).astype(mxu_dt)

    # ---- multi-head attention ----
    # Softmax normalization is deferred: un-normalized probs go through the PV matmul and
    # only the (tq, d_k) context is rescaled (EUP reciprocal). Each head's context is folded
    # straight into the output projection, so no (tq, D) context slab is materialized and
    # no masked sub-128-lane stores are emitted.
    # TODO(synk): batch 2-4 heads per dot_general (head-major K/V layout) to raise MXU
    # utilization when d_k << 128, and stream K/V flash-style (running max/sum) for very
    # long S on v7x (64 MiB VMEM).
    attn = jnp.zeros((tq, D), jnp.float32)
    for h in range(n_heads):
        sl = slice(h * d_k, (h + 1) * d_k)
        # q_h @ k_h^T without a materialized transpose: contract the d_k axis of both.
        s = jax.lax.dot_general(q[:, sl], k[:, sl], (((1,), (1,)), ((), ())),
                                preferred_element_type=jnp.float32)       # (tq, S)
        s = s - jnp.max(s, axis=-1, keepdims=True)
        p = jnp.exp(s)
        denom = jnp.sum(p, axis=-1, keepdims=True)                        # (tq, 1)
        ctx = jnp.dot(p.astype(mxu_dt), v[:, sl],
                      preferred_element_type=jnp.float32)                 # (tq, d_k)
        ctx = ctx * pl.reciprocal(denom, approx=recip_approx)             # deferred norm
        attn = attn + jnp.dot(ctx.astype(wo_ref.dtype),
                              wo_ref[pl.ds(h * d_k, d_k), :],
                              preferred_element_type=jnp.float32)         # (tq, D)
    attn = attn + bo_ref[0]

    # ---- residual + LayerNorm 1 (vector math in f32) ----
    x1 = _layer_norm(xq.astype(jnp.float32) + attn, g1_ref[0], be1_ref[0])

    # ---- position-wise feed-forward, chunked over d_ff ----
    # TODO(synk): for very large d_ff also stream w1/w2 from HBM (extra K-tiled grid axis or
    # pltpu.emit_pipeline) instead of keeping them fully VMEM resident.
    x1c = x1.astype(w1_ref.dtype)
    b1 = b1_ref[0]
    d_ff = w1_ref.shape[1]
    ff = jnp.zeros((tq, D), jnp.float32)
    for c in range(d_ff // ff_chunk):
        lo = c * ff_chunk
        h1 = _gelu_exact(jnp.dot(x1c, w1_ref[:, pl.ds(lo, ff_chunk)],
                                 preferred_element_type=jnp.float32)
                         + b1[lo:lo + ff_chunk])
        ff = ff + jnp.dot(h1.astype(w2_ref.dtype), w2_ref[pl.ds(lo, ff_chunk), :],
                          preferred_element_type=jnp.float32)
    ff = ff + b2_ref[0]

    # ---- residual + LayerNorm 2 ----
    x2 = _layer_norm(x1 + ff, g2_ref[0], be2_ref[0])
    o_ref[0] = x2.astype(o_ref.dtype)


# ----------------------------------------------------------------------------
# wrapper
# ----------------------------------------------------------------------------

def transformer_layer(x, params, *, n_heads, q_tile=None, recip_approx=True,
                      compute_dtype=None):
    """Pallas forward of TransformerLayer. `params` layout matches init_params()."""
    if compute_dtype is not None:
        # bf16 at the pallas_call boundary -> fast MXU path; accumulation stays f32.
        x = x.astype(compute_dtype)
        params = {k: v.astype(compute_dtype) for k, v in params.items()}

    B, S, D = x.shape
    assert D % n_heads == 0, "d_model must be divisible by n_heads"
    d_k = D // n_heads
    d_ff = params["w1"].shape[1]
    dt = x.dtype
    itemsize = jnp.dtype(dt).itemsize
    min_step = 16 if itemsize < 4 else 8            # bf16 sublane tile is (16, 128)

    vmem_cap = _vmem_capacity_bytes()
    # Larger query tiles on 128-MiB parts (v5e/v6e); stay at 256 on v7x (64 MiB VMEM).
    max_q_tile = 512 if vmem_cap >= 96 * 2**20 else 256
    if q_tile is None:
        q_tile = _pick_tile(S, max_q_tile, min_step)
    assert S % q_tile == 0
    n_qt = S // q_tile
    kv_tile = _pick_tile(S, 512, min_step)
    n_kvt = S // kv_tile
    ff_chunk = _pick_ff_chunk(d_ff)

    # Fold the 1/sqrt(d_k) attention scale into the query projection (zero kernel cost).
    scale = 1.0 / math.sqrt(d_k)
    wq = (params["wq"].astype(jnp.float32) * scale).astype(params["wq"].dtype)
    bq = (params["bq"].astype(jnp.float32) * scale).astype(params["bq"].dtype)

    kv_weights = [params[n] for n in ("wk", "bk", "wv", "bv")]
    attn_weights = [wq, bq] + [params[n] for n in
                               ("wo", "bo", "w1", "b1", "w2", "b2",
                                "g1", "be1", "g2", "be2")]

    single_buffer = _buffered_supported()
    vmem_ceiling = int(0.75 * vmem_cap)             # leave compiler-scratch headroom

    def _limit(estimate):
        return int(min(max(int(estimate), 32 * 2**20), vmem_ceiling))

    # ------------- call 1: K/V projection, grid = (B, S / kv_tile) -------------
    def _kv_call():
        wbytes = sum(int(w.size) * w.dtype.itemsize for w in kv_weights)
        est = (wbytes * (1 if single_buffer else 2)
               + 6 * kv_tile * D * itemsize         # x in + k/v out, double-buffered
               + 8 * kv_tile * D * 4)               # f32 temporaries + slack
        cost = pl.CostEstimate(
            flops=int(4 * B * S * D * D), transcendentals=0,
            bytes_accessed=int(3 * B * S * D * itemsize + wbytes))
        return pl.pallas_call(
            kv_projection_kernel,
            out_shape=(jax.ShapeDtypeStruct((B, S, D), dt),
                       jax.ShapeDtypeStruct((B, S, D), dt)),
            grid=(B, n_kvt),
            in_specs=[pl.BlockSpec((1, kv_tile, D), lambda b, i: (b, i, 0))]
                     + [_const_spec(tuple(w.shape), single_buffer) for w in kv_weights],
            out_specs=(pl.BlockSpec((1, kv_tile, D), lambda b, i: (b, i, 0)),
                       pl.BlockSpec((1, kv_tile, D), lambda b, i: (b, i, 0))),
            compiler_params=pltpu.CompilerParams(
                dimension_semantics=("parallel", "parallel"),
                vmem_limit_bytes=_limit(2 * est)),
            cost_estimate=cost,
        )(x, *kv_weights)

    # ------- call 2: attention + FFN + LayerNorms, grid = (B, S / q_tile) -------
    def _attn_call(k_arr, v_arr):
        # Single-buffer the per-batch K/V blocks on small-VMEM parts (v7x): their block
        # index only changes once per batch element.
        kv_single = single_buffer and vmem_cap < 96 * 2**20

        def kv_spec():
            if kv_single:
                return pl.BlockSpec((1, S, D), lambda b, i: (b, 0, 0),
                                    pipeline_mode=pl.Buffered(1))
            return pl.BlockSpec((1, S, D), lambda b, i: (b, 0, 0))

        wbytes = sum(int(w.size) * w.dtype.itemsize for w in attn_weights)
        kv_bufs = 1 if kv_single else 2
        est = (wbytes * (1 if single_buffer else 2)
               + 4 * q_tile * D * itemsize          # xq + out tiles, double-buffered
               + 2 * kv_bufs * S * D * itemsize     # K and V blocks
               + 4 * (6 * q_tile * D + 2 * q_tile * S + 2 * q_tile * ff_chunk))
        flops = int(2 * B * S * (2 * D * D + 2 * D * d_ff)
                    + 4 * B * n_heads * S * S * d_k)
        cost = pl.CostEstimate(
            flops=flops,
            transcendentals=int(B * n_heads * S * S + B * S * d_ff),
            bytes_accessed=int(4 * B * S * D * itemsize + wbytes))
        kernel = functools.partial(attn_ffn_kernel, n_heads=n_heads, d_k=d_k,
                                   ff_chunk=ff_chunk, recip_approx=recip_approx)
        return pl.pallas_call(
            kernel,
            out_shape=jax.ShapeDtypeStruct((B, S, D), dt),
            grid=(B, n_qt),
            in_specs=[pl.BlockSpec((1, q_tile, D), lambda b, i: (b, i, 0)),
                      kv_spec(), kv_spec()]
                     + [_const_spec(tuple(w.shape), single_buffer) for w in attn_weights],
            out_specs=pl.BlockSpec((1, q_tile, D), lambda b, i: (b, i, 0)),
            compiler_params=pltpu.CompilerParams(
                dimension_semantics=("parallel", "parallel"),
                vmem_limit_bytes=_limit(2 * est)),
            cost_estimate=cost,
        )(x, k_arr, v_arr, *attn_weights)

    k_arr, v_arr = _kv_call()
    return _attn_call(k_arr, v_arr)


# ----------------------------------------------------------------------------
# plain-JAX reference, params, tests
# ----------------------------------------------------------------------------

def transformer_layer_ref(x, params, *, n_heads):
    """Plain-JAX reference mirroring the PyTorch forward (dropout = identity)."""
    B, S, D = x.shape
    d_k = D // n_heads

    def lin(a, w, b):
        return a @ w + b[0]

    q = lin(x, params["wq"], params["bq"]).reshape(B, S, n_heads, d_k).transpose(0, 2, 1, 3)
    k = lin(x, params["wk"], params["bk"]).reshape(B, S, n_heads, d_k).transpose(0, 2, 1, 3)
    v = lin(x, params["wv"], params["bv"]).reshape(B, S, n_heads, d_k).transpose(0, 2, 1, 3)
    scores = jnp.einsum("bhqd,bhkd->bhqk", q, k) / math.sqrt(d_k)
    scores = jax.nn.softmax(scores, axis=-1)
    out = jnp.einsum("bhqk,bhkd->bhqd", scores, v).transpose(0, 2, 1, 3).reshape(B, S, D)
    attn = lin(out, params["wo"], params["bo"])

    def ln(a, g, be):
        m = jnp.mean(a, axis=-1, keepdims=True)
        var = jnp.mean((a - m) ** 2, axis=-1, keepdims=True)
        return (a - m) / jnp.sqrt(var + 1e-5) * g[0] + be[0]

    x1 = ln(x + attn, params["g1"], params["be1"])
    h1 = jax.nn.gelu(lin(x1, params["w1"], params["b1"]), approximate=False)
    ff = lin(h1, params["w2"], params["b2"])
    return ln(x1 + ff, params["g2"], params["be2"])


def init_params(key, d_model, d_ff):
    ks = jax.random.split(key, 8)
    s = 0.02

    def w(k, shape):
        return jax.random.normal(k, shape, jnp.float32) * s

    return {
        "wq": w(ks[0], (d_model, d_model)), "bq": jnp.zeros((1, d_model), jnp.float32),
        "wk": w(ks[1], (d_model, d_model)), "bk": jnp.zeros((1, d_model), jnp.float32),
        "wv": w(ks[2], (d_model, d_model)), "bv": jnp.zeros((1, d_model), jnp.float32),
        "wo": w(ks[3], (d_model, d_model)), "bo": jnp.zeros((1, d_model), jnp.float32),
        "w1": w(ks[4], (d_model, d_ff)),    "b1": w(ks[5], (1, d_ff)),
        "w2": w(ks[6], (d_ff, d_model)),    "b2": w(ks[7], (1, d_model)),
        "g1": jnp.ones((1, d_model), jnp.float32), "be1": jnp.zeros((1, d_model), jnp.float32),
        "g2": jnp.ones((1, d_model), jnp.float32), "be2": jnp.zeros((1, d_model), jnp.float32),
    }


def _run_case(key, *, B, S, D, H, D_FF, tol):
    kx, kp = jax.random.split(key)
    x = jax.random.normal(kx, (B, S, D), jnp.float32)
    params = init_params(kp, D, D_FF)

    out = jax.block_until_ready(transformer_layer(x, params, n_heads=H))
    ref = transformer_layer_ref(x, params, n_heads=H)

    assert out.shape == (B, S, D)
    err = float(jnp.max(jnp.abs(out - ref)))
    assert err < tol, f"mismatch vs reference: {err} (tol {tol})"
    return err


if __name__ == "__main__":
    root = jax.random.PRNGKey(0)
    k_small, k_large = jax.random.split(root)

    # Small config (toy sizes implied by the module).
    _run_case(k_small, B=2, S=8, D=32, H=4, D_FF=64, tol=1e-4)

    # Lane-aligned config exercising the hoisted K/V call + (batch, query-tile) grid.
    # Looser tolerance: MXU f32 accumulation order differs from the XLA reference and the
    # softmax denominator uses the EUP approx reciprocal (pass recip_approx=False for
    # strict parity).
    _run_case(k_large, B=2, S=512, D=128, H=8, D_FF=256, tol=2e-3)

    print("KERNEL_OK")
</pallas_src>

<mosaic_0001>
module attributes {stable_mosaic.version = 11 : i64} {
  func.func @_probe_kernel(%arg0: i32, %arg1: memref<8x128xf32, #tpu.memory_space<vmem>>, %arg2: memref<8x128xf32, #tpu.memory_space<vmem>>) attributes {dimension_semantics = [#tpu.dimension_semantics<arbitrary>], iteration_bounds = array<i64: 2>, scalar_prefetch = 0 : i64, scratch_operands = 0 : i64, tpu.core_type = #tpu.core_type<tc>, window_params = [{pipeline_mode = #tpu.pipeline_mode<synchronous>, transform_indices = @transform_0, window_bounds = array<i64: 8, 128>}, {transform_indices = @transform_1, window_bounds = array<i64: 8, 128>}]} {
    %c0 = arith.constant 0 : index
    %c0_0 = arith.constant 0 : index
    %0 = vector.load %arg1[%c0, %c0_0] : memref<8x128xf32, #tpu.memory_space<vmem>>, vector<8x128xf32>
    %cst = arith.constant 2.000000e+00 : f32
    %1 = vector.broadcast %cst : f32 to vector<8x128xf32>
    %2 = arith.mulf %0, %1 : vector<8x128xf32>
    %c0_1 = arith.constant 0 : index
    %c0_2 = arith.constant 0 : index
    %3 = vector.load %arg2[%c0_1, %c0_2] : memref<8x128xf32, #tpu.memory_space<vmem>>, vector<8x128xf32>
    tpu.vector_store %arg2[%c0_1, %c0_2], %2 {strides = array<i32>} : memref<8x128xf32, #tpu.memory_space<vmem>>, vector<8x128xf32>,
    return
  }
  func.func @transform_0(%arg0: i32) -> (i32, i32) {
    %c0_i32 = arith.constant 0 : i32
    %c0_i32_0 = arith.constant 0 : i32
    return %arg0, %c0_i32 : i32, i32
  }
  func.func @transform_1(%arg0: i32) -> (i32, i32) {
    %c0_i32 = arith.constant 0 : i32
    %c0_i32_0 = arith.constant 0 : i32
    return %arg0, %c0_i32 : i32, i32
  }
}

module attributes {stable_mosaic.version = 11 : i64} {
  func.func @kv_projection_kernel(%arg0: i32, %arg1: i32, %arg2: memref<1x8x32xf32, #tpu.memory_space<vmem>>, %arg3: memref<32x32xf32, #tpu.memory_space<vmem>>, %arg4: memref<1x32xf32, #tpu.memory_space<vmem>>, %arg5: memref<32x32xf32, #tpu.memory_space<vmem>>, %arg6: memref<1x32xf32, #tpu.memory_space<vmem>>, %arg7: memref<1x8x32xf32, #tpu.memory_space<vmem>>, %arg8: memref<1x8x32xf32, #tpu.memory_space<vmem>>) attributes {dimension_semantics = [#tpu.dimension_semantics<parallel>, #tpu.dimension_semantics<parallel>], iteration_bounds = array<i64: 2, 1>, scalar_prefetch = 0 : i64, scratch_operands = 0 : i64, tpu.core_type = #tpu.core_type<tc>, window_params = [{transform_indices = @transform_0, window_bounds = array<i64: 1, 8, 32>}, {pipeline_mode = #tpu.pipeline_mode<synchronous>, transform_indices = @transform_1, window_bounds = array<i64: 32, 32>}, {pipeline_mode = #tpu.pipeline_mode<synchronous>, transform_indices = @transform_2, window_bounds = array<i64: 1, 32>}, {pipeline_mode = #tpu.pipeline_mode<synchronous>, transform_indices = @transform_3, window_bounds = array<i64: 32, 32>}, {pipeline_mode = #tpu.pipeline_mode<synchronous>, transform_indices = @transform_4, window_bounds = array<i64: 1, 32>}, {transform_indices = @transform_5, window_bounds = array<i64: 1, 8, 32>}, {transform_indices = @transform_6, window_bounds = array<i64: 1, 8, 32>}]} {
    %c0 = arith.constant 0 : index
    %c0_0 = arith.constant 0 : index
    %c0_1 = arith.constant 0 : index
    %0 = vector.load %arg2[%c0, %c0_0, %c0_1] : memref<1x8x32xf32, #tpu.memory_space<vmem>>, vector<1x8x32xf32>
    %1 = vector.shape_cast %0 : vector<1x8x32xf32> to vector<8x32xf32>
    %c0_2 = arith.constant 0 : index
    %c0_3 = arith.constant 0 : index
    %2 = vector.load %arg3[%c0_2, %c0_3] : memref<32x32xf32, #tpu.memory_space<vmem>>, vector<32x32xf32>
    %cst = arith.constant dense<0.000000e+00> : vector<8x32xf32>
    %3 = tpu.matmul %1, %2, %cst {dimension_numbers = #tpu.dot_dimension_numbers<[1], [0], [0], [1], [0, 0, 1, 1], [], []>} : vector<8x32xf32>, vector<32x32xf32>, vector<8x32xf32> -> vector<8x32xf32>
    %c0_4 = arith.constant 0 : index
    %c0_5 = arith.constant 0 : index
    %4 = vector.load %arg4[%c0_4, %c0_5] : memref<1x32xf32, #tpu.memory_space<vmem>>, vector<1x32xf32>
    %5 = vector.shape_cast %4 : vector<1x32xf32> to vector<32xf32>
    %6 = vector.shape_cast %5 : vector<32xf32> to vector<1x32xf32>
    %7 = vector.broadcast %6 : vector<1x32xf32> to vector<8x32xf32>
    %8 = arith.addf %3, %7 : vector<8x32xf32>
    %c0_6 = arith.constant 0 : index
    %c0_7 = arith.constant 0 : index
    %9 = vector.load %arg5[%c0_6, %c0_7] : memref<32x32xf32, #tpu.memory_space<vmem>>, vector<32x32xf32>
    %cst_8 = arith.constant dense<0.000000e+00> : vector<8x32xf32>
    %10 = tpu.matmul %1, %9, %cst_8 {dimension_numbers = #tpu.dot_dimension_numbers<[1], [0], [0], [1], [0, 0, 1, 1], [], []>} : vector<8x32xf32>, vector<32x32xf32>, vector<8x32xf32> -> vector<8x32xf32>
    %c0_9 = arith.constant 0 : index
    %c0_10 = arith.constant 0 : index
    %11 = vector.load %arg6[%c0_9, %c0_10] : memref<1x32xf32, #tpu.memory_space<vmem>>, vector<1x32xf32>
    %12 = vector.shape_cast %11 : vector<1x32xf32> to vector<32xf32>
    %13 = vector.shape_cast %12 : vector<32xf32> to vector<1x32xf32>
    %14 = vector.broadcast %13 : vector<1x32xf32> to vector<8x32xf32>
    %15 = arith.addf %10, %14 : vector<8x32xf32>
    %c0_11 = arith.constant 0 : index
    %c0_12 = arith.constant 0 : index
    %c0_13 = arith.constant 0 : index
    %16 = vector.load %arg7[%c0_11, %c0_12, %c0_13] : memref<1x8x32xf32, #tpu.memory_space<vmem>>, vector<1x8x32xf32>
    %17 = vector.shape_cast %16 : vector<1x8x32xf32> to vector<8x32xf32>
    %18 = vector.shape_cast %8 : vector<8x32xf32> to vector<1x8x32xf32>
    tpu.vector_store %arg7[%c0_11, %c0_12, %c0_13], %18 {strides = array<i32>} : memref<1x8x32xf32, #tpu.memory_space<vmem>>, vector<1x8x32xf32>,
    %c0_14 = arith.constant 0 : index
    %c0_15 = arith.constant 0 : index
    %c0_16 = arith.constant 0 : index
    %19 = vector.load %arg8[%c0_14, %c0_15, %c0_16] : memref<1x8x32xf32, #tpu.memory_space<vmem>>, vector<1x8x32xf32>
    %20 = vector.shape_cast %19 : vector<1x8x32xf32> to vector<8x32xf32>
    %21 = vector.shape_cast %15 : vector<8x32xf32> to vector<1x8x32xf32>
    tpu.vector_store %arg8[%c0_14, %c0_15, %c0_16], %21 {strides = array<i32>} : memref<1x8x32xf32, #tpu.memory_space<vmem>>, vector<1x8x32xf32>,
    return
  }
  func.func @transform_0(%arg0: i32, %arg1: i32) -> (i32, i32, i32) {
    %c0_i32 = arith.constant 0 : i32
    %c0_i32_0 = arith.constant 0 : i32
    return %arg0, %arg1, %c0_i32 : i32, i32, i32
  }
  func.func @transform_1(%arg0: i32, %arg1: i32) -> (i32, i32) {
    %c0_i32 = arith.constant 0 : i32
    %c0_i32_0 = arith.constant 0 : i32
    %c0_i32_1 = arith.constant 0 : i32
    return %c0_i32, %c0_i32_0 : i32, i32
  }
  func.func @transform_2(%arg0: i32, %arg1: i32) -> (i32, i32) {
    %c0_i32 = arith.constant 0 : i32
    %c0_i32_0 = arith.constant 0 : i32
    %c0_i32_1 = arith.constant 0 : i32
    return %c0_i32, %c0_i32_0 : i32, i32
  }
  func.func @transform_3(%arg0: i32, %arg1: i32) -> (i32, i32) {
    %c0_i32 = arith.constant 0 : i32
    %c0_i32_0 = arith.constant 0 : i32
    %c0_i32_1 = arith.constant 0 : i32
    return %c0_i32, %c0_i32_0 : i32, i32
  }
  func.func @transform_4(%arg0: i32, %arg1: i32) -> (i32, i32) {
    %c0_i32 = arith.constant 0 : i32
    %c0_i32_0 = arith.constant 0 : i32
    %c0_i32_1 = arith.constant 0 : i32
    return %c0_i32, %c0_i32_0 : i32, i32
  }
  func.func @transform_5(%arg0: i32, %arg1: i32) -> (i32, i32, i32) {
    %c0_i32 = arith.constant 0 : i32
    %c0_i32_0 = arith.constant 0 : i32
    return %arg0, %arg1, %c0_i32 : i32, i32, i32
  }
  func.func @transform_6(%arg0: i32, %arg1: i32) -> (i32, i32, i32) {
    %c0_i32 = arith.constant 0 : i32
    %c0_i32_0 = arith.constant 0 : i32
    return %arg0, %arg1, %c0_i32 : i32, i32, i32
  }
}

</mosaic_0001>

<bundles_post_ra>
// kernel: tpu_custom_call.1
= control target key start
LH: loop header
LB: loop body
LE: loop exit
PB: predicated region body
PF: predicated region fallthrough
CT: control target
= control target key end

     0   :  { %6 = vsyncpa [#allocation3], 0  ;;  %s481_s0 = inlined_call_operand.hbm [shape: f32[16,128], index: 0, kind: input, shape index: {}]   ;;  %s482_s1 = inlined_call_operand.hbm [shape: f32[16,128], index: 1, kind: output, shape index: {}]  }
   0x1   :  { %7 = vsyncpa [#allocation4], 0 }
   0x2   :  { %9 = vsyncpa [#allocation4 + $0x1], 0  ;;  %s361_s6 = smov 0   ;;  %s363_s7 = smov 0  }
   0x3   :  { %s365_s8 = smov 0   ;;  %s367_s9 = smov 0  }
   0x4 LB: > { %s382_s10 = sadd.s32 4294967295, %s348_s9   ;;  %s197_s11 = sadd.s32 4294967294, %s348_s9   ;;  %s348_s9 = sphi %s367_s9, %s491_s9   ;;  %s344_s8 = sphi %s365_s8, %s490_s8   ;;  %s340_s7 = sphi %s363_s7, %s489_s7   ;;  %s336_s6 = sphi %s361_s6, %s488_s6  }
   0x5   : > { %s386_s12 = sadd.s32 1, %s348_s9   ;;  %s22_s13 = sadd.s32 1, %s344_s8 }
   0x6   : > { %s19_s14 = ssub.s32 %s348_s9, %s386_s12  ;;  %p35_p0 = scmp.ne.s32.totalorder %s340_s7, %s336_s6 }
   0x7   : > { %p20_p1 = scmp.eq.s32.totalorder %s19_s14, 0  ;;  %p36_p2 = scmp.eq.s32.totalorder %s382_s10, 0 }
   0x8   : > { %p58_p3 = scmp.ne.s32.totalorder %s344_s8, %s340_s7  ;;  %p59_p4 = scmp.eq.s32.totalorder %s382_s10, 1 }
   0x9   : > { %s398_s15 = scalar_select %p20_p1, %s344_s8, %s22_s13  }
   0xa   : > { %p400_p5 = por %p36_p2, %p35_p0  ;;  %p404_p6 = por %p59_p4, %p58_p3 }
   0xb   : > { %p65_p7 = scmp.eq.s32.totalorder %s197_s11, 1  ;;  %p198_p8 = scmp.ge.s32.totalorder %s348_s9, 1 }
   0xc   : > { %p72_p9 = scmp.lt.s32.totalorder %s348_s9, 3  ;;  %s199_s18 = sshll.u32 %s382_s10, 3 }
   0xd   : > { %p411_p10 = por %p65_p7, %p35_p0  ;;  %s84_s22 = scalar_lea.hbm %s481_s0, %s199_s18 }
   0xe   : > { %p420_p11 = pnand %p198_p8, %p72_p9  ;;  %s86_s24 = sshll.u32 %s84_s22, 4  ;;  %s87_s24 = int_to_ptr.hbm [resolvable:$true] %s86_s24 }
   0xf   : > { %s350_s25 = smov [#allocation2]   ;;  %s252_s28 = sshra.s32 %s87_s24, 4  ;;  %s253_s28 = int_to_ptr.hbm [resolvable:$true] %s252_s28 }
  0x10   : > { %p210_p12 = pneg %p420_p11  ;;  %s88_s26 = sshll.u32 %s350_s25, 4  ;;  %s89_s26 = int_to_ptr.vmem [resolvable:$true] %s88_s26 }
  0x11   : > { %s254_s29 = scalar_lea.hbm %s253_s28, 8  ;;  %s259_s3 = scalar_lea.hbm %s481_s0, 16 }
  0x12   : > { %p428_p13 = pnand %p210_p12, %p400_p5  ;;  %p255_p0 = scmp.ne.s32.totalorder %s253_s28, %s254_s29 }
  0x13   : > { %p260_p4 = scmp.lt.s32.totalorder %s253_s28, %s481_s0  ;;  %p261_p7 = scmp.lt.s32.totalorder %s259_s3, %s254_s29 }
  0x14   : > { %p256_p1 = pneg %p428_p13 }
  0x15   : > { %p262_p8 = por %p261_p7, %p260_p4 }
  0x16   : > { %p257_p2 = pnand %p256_p1, %p255_p0 }
  0x18   : > { %p258_p3 = pneg %p257_p2 }
  0x1a   : > { %p263_p9 = pnand %p262_p8, %p258_p3 }
  0x1c   : > { %266 = shalt.err (!%p263_p9)
}
  0x1d   : > { %213 = dma.hbm_to_vmem [thread:$0]  (!%p428_p13), %s87_s24, 128, %s89_s26, [#allocation3]  }
  0x1e   : > { %101 = sbr.rel (%p420_p11) target bundleno = 51 (0x33), region = 24 }
  0x23   : > { %327 = dma.done.wait (%p400_p5), [#allocation3], 128  }
  0x24   : > { %329 = vsyncadd (%p400_p5), [#allocation3], 4294967168  ;;  %s114_s11 = sand.u32 1, %s340_s7   ;;  %s131_s21 = scalar_lea.hbm %s482_s1, %s199_s18  ;;  %v117_v0 = vld [vmem:[#allocation2] sm:$0xff] }
  0x25   : > { %s201_s13 = sshll.u32 %s114_s11, 3  ;;  %s135_s23 = sshll.u32 %s131_s21, 4  ;;  %v118_v1 = vmul.f32 2.0, %v117_v0  ;;  %s136_s23 = int_to_ptr.hbm [resolvable:$true] %s135_s23 }
  0x26   : > { %s116_s22 = scalar_lea.vmem [#allocation5], %s201_s13  ;;  %s121_s16 = scalar_lea.sflag [#allocation4], %s114_s11 }
  0x27   : > { %s133_s24 = sshll.u32 %s116_s22, 4  ;;  %119 = vst [vmem:[%s116_s22] sm:$0xff] %v118_v1  ;;  %s296_s25 = sshra.s32 %s136_s23, 4  ;;  %s134_s24 = int_to_ptr.vmem [resolvable:$true] %s133_s24  ;;  %s297_s25 = int_to_ptr.hbm [resolvable:$true] %s296_s25 }
  0x28   : > { %s298_s26 = scalar_lea.hbm %s297_s25, 8  ;;  %s302_s18 = scalar_lea.hbm %s482_s1, 16 }
  0x29   : > { %p299_p5 = scmp.ne.s32.totalorder %s297_s25, %s298_s26  ;;  %p303_p13 = scmp.lt.s32.totalorder %s297_s25, %s482_s1 }
  0x2a   : > { %p304_p0 = scmp.lt.s32.totalorder %s302_s18, %s298_s26 }
  0x2b   : > { %p300_p11 = pnand %p299_p5, %p404_p6 }
  0x2c   : > { %p305_p1 = por %p304_p0, %p303_p13 }
  0x2d   : > { %p301_p12 = pneg %p300_p11 }
  0x2f   : > { %p306_p2 = pnand %p305_p1, %p301_p12 }
  0x31   : > { %309 = shalt.err (!%p306_p2)
}
  0x32   : > { %208 = dma.vmem_to_hbm [thread:$0]  (%p404_p6), %s134_s24, 128, %s136_s23, %s121_s16  }
  0x33 PF: > { %p218_p3 = scmp.ge.s32.totalorder %s348_s9, 2  ;;  %s147_s30 = sand.u32 1, %s336_s6  }
  0x34   : > { %s148_s2 = scalar_lea.sflag [#allocation4], %s147_s30 }
  0x35   : > { %p215_p4 = pnand %p218_p3, %p411_p10 }
  0x37   : > { %p216_p7 = pneg %p215_p4 }
  0x39   : > { %331 = dma.done.wait (%p216_p7), %s148_s2, 128  }
  0x3a   : > { %333 = vsyncadd (%p216_p7), %s148_s2, 4294967168  ;;  %p12_p8 = scmp.ge.s32.totalorder %s386_s12, 4   ;;  %s488_s6 = smov %s340_s7 }
  0x3b   : > { %s489_s7 = smov %s344_s8  ;;  %s490_s8 = smov %s398_s15 }
  0x3c   : > { %s491_s9 = smov %s386_s12  ;;  %14 = sbr.rel (!%p12_p8) target bundleno = 4 (0x4), region = 62 }
  0x41   :  { %154 = vsyncpa [#allocation3], 1 }
  0x42   :  { %156 = vsyncpa [#allocation3 + $0x1], 1 }
  0x43   :  { %157 = vsyncpa [#allocation4], 1 }
  0x44   :  { %159 = vsyncpa [#allocation4 + $0x1], 1 }

// kernel: tpu_custom_call.1
= control target key start
LH: loop header
LB: loop body
LE: loop exit
PB: predicated region body
PF: predicated region fallthrough
CT: control target
= control target key end

     0   :  { %s1113_s0 = inlined_call_operand.hbm [shape: f32[2,8,32], index: 0, kind: input, shape index: {}]   ;;  %s1114_s1 = inlined_call_operand.hbm [shape: f32[32,32], index: 1, kind: input, shape index: {}]   ;;  %s1115_s2 = inlined_call_operand.vmem [shape: f32[1,32], index: 2, kind: input, shape index: {}]   ;;  %s1116_s3 = inlined_call_operand.hbm [shape: f32[32,32], index: 3, kind: input, shape index: {}]   ;;  %s1117_s4 = inlined_call_operand.vmem [shape: f32[1,32], index: 4, kind: input, shape index: {}]   ;;  %s1118_s5 = inlined_call_operand.hbm [shape: f32[2,8,32], index: 5, kind: output, shape index: {0}]   ;;  %s1119_s6 = inlined_call_operand.hbm [shape: f32[2,8,32], index: 6, kind: output, shape index: {1}]  }
   0x1   :  { %1120 = sst [smem:[#allocation15_spill]] %s1114_s1 }
   0x2   :  { %12 = vsyncpa [#allocation3], 0 }
   0x3   :  { %14 = vsyncpa [#allocation3 + $0x1], 0 }
   0x4   :  { %15 = vsyncpa [#allocation6], 0 }
   0x5   :  { %16 = vsyncpa [#allocation4], 0 }
   0x6   :  { %18 = vsyncpa [#allocation4 + $0x1], 0 }
   0x7   :  { %19 = vsyncpa [#allocation10], 0 }
   0x8   :  { %21 = vsyncpa [#allocation10 + $0x1], 0  ;;  %s928_s21 = smov 0   ;;  %s930_s22 = smov 0  }
   0x9   :  { %s932_s23 = smov 0   ;;  %s934_s24 = smov 0  }
   0xa   :  { %s936_s25 = smov 0   ;;  %s938_s26 = smov 0  }
   0xb LB: > { %s565_s27 = sadd.s32 4294967295, %s887_s26   ;;  %p567_p0 = scmp.ge.s32.totalorder %s887_s26, 1  ;;  %s887_s26 = sphi %s938_s26, %s27_s26   ;;  %s883_s25 = sphi %s936_s25, %s1131_s25   ;;  %s879_s24 = sphi %s934_s24, %s1130_s24   ;;  %s875_s23 = sphi %s932_s23, %s1129_s23   ;;  %s871_s22 = sphi %s930_s22, %s1128_s22   ;;  %s867_s21 = sphi %s928_s21, %s1127_s21  }
   0xc   : > { %p962_p1 = scmp.eq.s32.totalorder %s565_s27, 0  ;;  %p212_p2 = scmp.lt.s32.totalorder %s887_s26, 3 }
   0xd   : > { %s1122_s1 = sld [smem:[#allocation15_spill]]  ;;  %s889_s9 = smov [#allocation5]  }
   0xe   : > { %p970_p3 = pnand %p567_p0, %p212_p2  ;;  %s225_s10 = sshll.u32 %s889_s9, 4  ;;  %s226_s10 = int_to_ptr.vmem [resolvable:$true] %s225_s10 }
   0xf   : > { %p570_p6 = scmp.ge.s32.totalorder %s887_s26, 2  ;;  %s240_s13 = sshll.u32 %s1116_s3, 4  ;;  %s241_s13 = int_to_ptr.hbm [resolvable:$true] %s240_s13 }
  0x10   : > { %p601_p4 = pneg %p970_p3  ;;  %s890_s14 = smov 128  }
  0x11   : > { %s891_s15 = smov 8   ;;  %s892_s16 = smov [#allocation7]  }
  0x12   : > { %p602_p5 = pnand %p601_p4, %p962_p1  ;;  %s242_s17 = sshll.u32 %s892_s16, 4  ;;  %s243_s17 = int_to_ptr.vmem [resolvable:$true] %s242_s17 }
  0x13   : > { %s223_s7 = sshll.u32 %s1122_s1, 4  ;;  %s39_s18 = sadd.s32 1, %s883_s25  ;;  %s224_s7 = int_to_ptr.hbm [resolvable:$true] %s223_s7 }
  0x14   : > { %604 = dma.hbm_to_vmem [thread:$0]  (!%p602_p5), %s224_s7, 512, %s226_s10, [#allocation6], %s890_s14, %s890_s14, %s891_s15  }
  0x15   : > { %607 = dma.hbm_to_vmem [thread:$0]  (!%p602_p5), %s241_s13, 512, %s243_s17, [#allocation6], %s890_s14, %s890_s14, %s891_s15  }
  0x16   : > { %s566_s19 = sadd.s32 4294967294, %s887_s26   ;;  %p41_p7 = scmp.ge.s32.totalorder %s39_s18, 2 }
  0x17   : > { %s48_s20 = sadd.s32 1, %s875_s23  ;;  %p55_p8 = scmp.ne.s32.totalorder %s875_s23, %s871_s22 }
  0x18   : > { %s1133_s18 = smov (%p41_p7, %s39_s18), 0  ;;  %p56_p9 = scmp.eq.s32.totalorder %s887_s26, 0 }
  0x19   : > { %p61_p10 = scmp.ne.s32.totalorder %s871_s22, %s867_s21  ;;  %s43_s29 = ssub.s32 %s883_s25, %s1133_s18 }
  0x1a   : > { %p171_p11 = scmp.eq.s32.totalorder %s565_s27, 1  ;;  %p46_p12 = scmp.eq.s32.totalorder %s43_s29, 0 }
  0x1b   : > { %p998_p13 = por %p962_p1, %p61_p10  ;;  %p177_p2 = scmp.eq.s32.totalorder %s566_s19, 1 }
  0x1c   : > { %p1002_p0 = por %p171_p11, %p55_p8  ;;  %p57_p4 = por %p56_p9, %p55_p8 }
  0x1d   : > { %s1007_s9 = scalar_select %p46_p12, %s875_s23, %s48_s20  }
  0x1e   : > { %p1009_p5 = por %p177_p2, %p61_p10  ;;  %s259_s11 = sand.u32 1, %s875_s23  }
  0x1f   : > { %s572_s27 = sshll.u32 %s883_s25, 3  ;;  %p621_p7 = scmp.lt.s32.totalorder %s887_s26, 2 }
  0x20   : > { %s571_s12 = sshll.u32 %s259_s11, 3  ;;  %s268_s15 = scalar_lea.hbm %s1113_s0, %s572_s27 }
  0x21   : > { %s270_s16 = sshll.u32 %s268_s15, 4  ;;  %s263_s17 = scalar_lea.vmem [#allocation2], %s571_s12  ;;  %s271_s16 = int_to_ptr.hbm [resolvable:$true] %s270_s16 }
  0x22   : > { %s272_s29 = sshll.u32 %s263_s17, 4  ;;  %p609_p11 = pnand %p621_p7, %p57_p4  ;;  %s273_s29 = int_to_ptr.vmem [resolvable:$true] %s272_s29 }
  0x23   : > { %s260_s19 = scalar_lea.sflag [#allocation3], %s259_s11  ;;  %281 = sbr.rel (%p970_p3) target bundleno = 194 (0xc2), region = 40 }
  0x24   : > { %611 = dma.hbm_to_vmem [thread:$0]  (!%p609_p11), %s271_s16, 128, %s273_s29, %s260_s19  }
  0x25   : > { %s1022_s20 = sand.u32 (!%p970_p3), 1, %s871_s22  }
  0x26   : > { %s1025_s1 = sshll.u32 (!%p970_p3), %s1022_s20, 3  ;;  %s284_s27 = scalar_lea.sflag (!%p970_p3), [#allocation3], %s1022_s20 }
  0x27   : > { %s287_s12 = scalar_lea.vmem (!%p970_p3), [#allocation2], %s1025_s1 }
  0x28   : > { %850 = dma.done.wait (%p998_p13), %s284_s27, 128  }
  0x29   : > { %852 = vsyncadd (%p998_p13), %s284_s27, 4294967168 }
  0x2a   : > { %854 = dma.done.wait (%p962_p1), [#allocation6], 1024  }
  0x2b   : > { %856 = vsyncadd (%p962_p1), [#allocation6], 4294966272  ;;  %v336_v0 = vld [vmem:[#allocation5 + $0x18] sm:$0xff]  ;;  %v335_v2 = vld [vmem:[#allocation5 + $0x10] sm:$0xff]  ;;  %vm341_vm0 = vcmask 261120   ;;  %s583_s28 = sshll.u32 %s879_s24, 3 }
  0x2c   : > { %v368_v1 = vld [vmem:[#allocation7 + $0x18] sm:$0xff]  ;;  %357 = vmatpush.msra.mxu0 %v336_v0  ;;  %v367_v3 = vld [vmem:[#allocation7 + $0x10] sm:$0xff]  ;;  %v334_v4 = vld [vmem:[#allocation5 + $0x8] sm:$0xff]  ;;  %s412_s11 = scalar_lea.hbm %s1118_s5, %s583_s28  ;;  %s427_s15 = scalar_lea.hbm %s1119_s6, %s583_s28 }
  0x2d   : > { %385 = vmatpush.msra.mxu1 %v368_v1  ;;  %v366_v5 = vld [vmem:[#allocation7 + $0x8] sm:$0xff]  ;;  %v333_v6 = vld [vmem:[#allocation5] sm:$0xff]  ;;  %v332_v8 = vld [vmem:[%s287_s12] sm:$0xff]  ;;  %s324_s27 = scalar_lea.vmem [#allocation8], %s1025_s1  ;;  %s416_s24 = sshll.u32 %s412_s11, 4  ;;  %s417_s24 = int_to_ptr.hbm [resolvable:$true] %s416_s24 }
  0x2e   : > { %358 = vmatpush.msra.mxu0 %v335_v2  ;;  %v365_v7 = vld [vmem:[#allocation7] sm:$0xff]  ;;  %v677_v9 = vld [vmem:[%s1115_s2] ss:$0 sm:$0xff]  ;;  %s1053_s12 = sshll.u32 %s324_s27, 4  ;;  %s331_s8 = scalar_lea.vmem [#allocation9], %s1025_s1  ;;  %s415_s12 = int_to_ptr.vmem [resolvable:$true] %s1053_s12 }
  0x2f   : > { %386 = vmatpush.msra.mxu1 %v367_v3  ;;  %v678_v10 = vld [vmem:[%s1117_s4] ss:$0 sm:$0xff]  ;;  %s1056_s30 = sshll.u32 %s331_s8, 4  ;;  %s431_s28 = sshll.u32 %s427_s15, 4  ;;  %s430_s30 = int_to_ptr.vmem [resolvable:$true] %s1056_s30  ;;  %s1060_s28 = int_to_ptr.hbm [resolvable:$true] %s431_s28 }
  0x30   : > { %359 = vmatpush.msra.mxu0 %v334_v4  ;;  %s396_s13 = scalar_lea.sflag [#allocation4], %s1022_s20  ;;  %s783_s14 = sshra.s32 %s417_s24, 4  ;;  %s784_s14 = int_to_ptr.hbm [resolvable:$true] %s783_s14 }
  0x31   : > { %387 = vmatpush.msra.mxu1 %v366_v5  ;;  %s785_s1 = scalar_lea.hbm %s784_s14, 8  ;;  %s789_s16 = scalar_lea.hbm %s1118_s5, 16 }
  0x32   : > { %360 = vmatpush.msra.mxu0 %v333_v6  ;;  %p786_p1 = scmp.ne.s32.totalorder %s784_s14, %s785_s1  ;;  %p790_p9 = scmp.lt.s32.totalorder %s784_s14, %s1118_s5 }
  0x33   : > { %388 = vmatpush.msra.mxu1 %v365_v7  ;;  %579 = vmatmul.msk.f32.vlgmr.msra.gmra.mxu0 %vm341_vm0, %v332_v8  ;;  %p791_p10 = scmp.lt.s32.totalorder %s789_s16, %s785_s1 }
  0x34   : > { %580 = vmatmul.msk.f32.vlgmr.msra.gmra.mxu1 %vm341_vm0, %v332_v8  ;;  %p787_p3 = pnand %p786_p1, %p1002_p0 }
  0x35   : > { %p792_p12 = por %p791_p10, %p790_p9 }
  0x36   : > { %p788_p8 = pneg %p787_p3 }
  0x38   : > { %p793_p13 = pnand %p792_p12, %p788_p8 }
  0xb0   : > { %v362_v11 = vpop.f32.mrf.mxu0 }
  0xb1   : > { %v390_v12 = vpop.f32.mrf.mxu1  ;;  %v363_v13 = vadd.f32 %v677_v9, %v362_v11 }
  0xb2   : > { %v391_v14 = vadd.f32 %v678_v10, %v390_v12 }
  0xb3   : > { %393 = vst.msk [vmem:[%s324_s27] sm:$0xff] %vm341_vm0, %v363_v13 }
  0xb4   : > { %796 = shalt.err (!%p793_p13)
}
  0xb5   : > { %597 = dma.vmem_to_hbm [thread:$0]  (%p1002_p0), %s415_s12, 128, %s417_s24, %s396_s13   ;;  %394 = vst.msk [vmem:[%s331_s8] sm:$0xff] %vm341_vm0, %v391_v14 }
  0xb6   : > { %s401_s19 = scalar_lea.sflag [#allocation10], %s1022_s20  ;;  %s811_s27 = sshra.s32 %s1060_s28, 4  ;;  %s812_s27 = int_to_ptr.hbm [resolvable:$true] %s811_s27 }
  0xb7   : > { %s813_s11 = scalar_lea.hbm %s812_s27, 8  ;;  %s817_s15 = scalar_lea.hbm %s1119_s6, 16 }
  0xb8   : > { %p814_p2 = scmp.ne.s32.totalorder %s812_s27, %s813_s11  ;;  %p818_p11 = scmp.lt.s32.totalorder %s812_s27, %s1119_s6 }
  0xb9   : > { %p819_p1 = scmp.lt.s32.totalorder %s817_s15, %s813_s11 }
  0xba   : > { %p815_p4 = pnand %p814_p2, %p1002_p0 }
  0xbb   : > { %p820_p3 = por %p819_p1, %p818_p11 }
  0xbc   : > { %p816_p7 = pneg %p815_p4 }
  0xbe   : > { %p821_p8 = pnand %p820_p3, %p816_p7 }
  0xc0   : > { %824 = shalt.err (!%p821_p8)
}
  0xc1   : > { %598 = dma.vmem_to_hbm [thread:$0]  (%p1002_p0), %s430_s30, 128, %s1060_s28, %s401_s19  }
  0xc2 PF: > { %s443_s20 = sand.u32 1, %s867_s21   ;;  %p613_p9 = pnand %p570_p6, %p1009_p5 }
  0xc3   : > { %s444_s12 = scalar_lea.sflag [#allocation4], %s443_s20 }
  0xc4   : > { %p614_p10 = pneg %p613_p9 }
  0xc6   : > { %858 = dma.done.wait (%p614_p10), %s444_s12, 128  }
  0xc7   : > { %860 = vsyncadd (%p614_p10), %s444_s12, 4294967168  ;;  %s454_s24 = scalar_lea.sflag [#allocation10], %s443_s20 }
  0xc8   : > { %862 = dma.done.wait (%p614_p10), %s454_s24, 128  }
  0xc9   : > { %864 = vsyncadd (%p614_p10), %s454_s24, 4294967168  ;;  %s27_s26 = sadd.s32 1, %s887_s26   ;;  %s1127_s21 = smov %s871_s22 }
  0xca   : > { %p24_p12 = scmp.ge.s32.totalorder %s27_s26, 4   ;;  %s1128_s22 = smov %s875_s23 }
  0xcb   : > { %s1129_s23 = smov %s1007_s9  ;;  %s1130_s24 = smov %s883_s25 }
  0xcc   : > { %s1131_s25 = smov %s1133_s18  ;;  %26 = sbr.rel (!%p24_p12) target bundleno = 11 (0xb), region = 110 }
  0xd1   :  { %460 = vsyncpa [#allocation3], 1 }
  0xd2   :  { %462 = vsyncpa [#allocation3 + $0x1], 1 }
  0xd3   :  { %463 = vsyncpa [#allocation6], 1 }
  0xd4   :  { %464 = vsyncpa [#allocation4], 1 }
  0xd5   :  { %466 = vsyncpa [#allocation4 + $0x1], 1 }
  0xd6   :  { %467 = vsyncpa [#allocation10], 1 }
  0xd7   :  { %469 = vsyncpa [#allocation10 + $0x1], 1 }

</bundles_post_ra>
